<compile_context>
chip_gen: v7x
topology: tpu7x:2x2x1
jax: 0.10.0
libtpu: 0.0.40
codegen_flags: <defaults>
</compile_context>

<pallas_src>
import functools
import math

import numpy as np
import jax
import jax.numpy as jnp
from jax.experimental import pallas as pl
from jax.experimental.pallas import tpu as pltpu

_MiB = 1024 * 1024


def _round_up(v, m):
    return ((v + m - 1) // m) * m


def _tpu_info():
    """Best-effort VMEM capacity + TensorCore-per-device count (generation aware)."""
    vmem_capacity = 64 * _MiB   # conservative default (v7x per-TC VMEM)
    num_tc = 1
    try:
        cap = getattr(pltpu.get_tpu_info(), "vmem_capacity_bytes", None)
        if cap:
            vmem_capacity = int(cap)
    except Exception:
        pass
    try:
        kind = jax.devices()[0].device_kind.lower()
        # chips whose single JAX device fronts 2 TensorCores (v7x / megacore)
        if ("v7" in kind) or ("7x" in kind) or ("v4" in kind) or ("v5p" in kind):
            num_tc = 2
    except Exception:
        pass
    return vmem_capacity, num_tc


def _density_kernel(ax_ref, ay_ref, bxl_ref, bxh_ref, byl_ref, byh_ref, dm_ref, *,
                    use_bf16):
    k = pl.program_id(2)   # node-tile (reduction) axis, innermost

    @pl.when(k == 0)
    def _():
        dm_ref[...] = jnp.zeros_like(dm_ref)

    ax = ax_ref[0]            # (8, K) lane-major node attrs
    cx_lo = ax[0]             # (K,)  = cx - targetHalfSizeX
    cx_hi = ax[1]             # (K,)  = cx + targetHalfSizeX
    sf = ax[2]                # (K,)  = 0.25*sx*sy/(hsx*hsy); == 0 for padded nodes

    ay = ay_ref[0]            # (K, 8) sublane-major node attrs (pre-transposed)
    cy_lo = ay[:, 0:1]        # (K, 1) = cy - targetHalfSizeY
    cy_hi = ay[:, 1:2]        # (K, 1) = cy + targetHalfSizeY

    bxl = bxl_ref[...]        # (nbx_block, 1)   bin lower x edges
    bxh = bxh_ref[...]        # (nbx_block, 1)   bin upper x edges
    byl = byl_ref[...]        # (1, nby_block)
    byh = byh_ref[...]

    # x-overlap (nbx_block, K).  sf must be folded in BEFORE the matmul (and before
    # the bf16 cast) so that zero-size padded nodes contribute exactly nothing.
    ox = jnp.maximum(
        jnp.minimum(cx_hi[None, :], bxh) - jnp.maximum(cx_lo[None, :], bxl), 0.0)
    ox = ox * sf[None, :]
    # y-overlap (K, nby_block); node dim is already on sublanes -> feeds the MXU RHS
    # directly, no XLU transpose.
    oy = jnp.maximum(jnp.minimum(cy_hi, byh) - jnp.maximum(cy_lo, byl), 0.0)

    if use_bf16:
        ox = ox.astype(jnp.bfloat16)
        oy = oy.astype(jnp.bfloat16)

    # density_block += Ox @ Oy : contract over the K node dim on the MXU,
    # f32 accumulation into the resident output block.
    dm_ref[...] += jnp.dot(ox, oy, preferred_element_type=jnp.float32)


def electric_overflow_forward(pos, node_size_x, node_size_y, initial_density_map, *,
                              xl, yl, xh, yh, bin_size_x, bin_size_y,
                              num_movable_nodes, num_filler_nodes,
                              target_density, stretch_ratio, use_bf16=True):
    num_nodes = node_size_x.shape[0]
    nbx = int(math.ceil((xh - xl) / bin_size_x))
    nby = int(math.ceil((yh - yl) / bin_size_y))
    hsx = 0.5 * stretch_ratio * bin_size_x
    hsy = 0.5 * stretch_ratio * bin_size_y
    bin_area = bin_size_x * bin_size_y
    thr = target_density * bin_area
    sf_scale = 0.25 / (hsx * hsy)

    vmem_capacity, num_tc = _tpu_info()
    budget = max(24 * _MiB, vmem_capacity - max(8 * _MiB, vmem_capacity // 8))

    # movable + filler nodes contribute; terminals enter via initial_density_map.
    # Contiguous slices (movable prefix + filler suffix) -> no XLA gather.
    x = pos[:num_nodes]
    y = pos[num_nodes:2 * num_nodes]
    fs = num_nodes - num_filler_nodes
    xs = jnp.concatenate([x[:num_movable_nodes], x[fs:]]).astype(jnp.float32)
    ys = jnp.concatenate([y[:num_movable_nodes], y[fs:]]).astype(jnp.float32)
    sx = jnp.concatenate([node_size_x[:num_movable_nodes],
                          node_size_x[fs:]]).astype(jnp.float32)
    sy = jnp.concatenate([node_size_y[:num_movable_nodes],
                          node_size_y[fs:]]).astype(jnp.float32)
    n_sel = num_movable_nodes + num_filler_nodes

    # --- bin-map padding: lane-dense, full MXU M whenever nbx allows it ---
    if num_tc >= 2 and _round_up(nbx, 128) >= 256:
        num_row_blocks = 2                      # one half-map per TensorCore (v7x)
        nbx_pad = _round_up(nbx, 128 * num_row_blocks)
    else:
        num_row_blocks = 1                      # single-TC v5e/v6e: never split rows
        nbx_pad = _round_up(nbx, 128) if nbx >= 96 else _round_up(max(nbx, 1), 8)
    nbx_block = nbx_pad // num_row_blocks

    nby_pad_min = _round_up(max(nby, 1), 128)

    # --- adaptive contraction depth K (node tile) ---
    node_tile = 1024 if max(nbx_pad, nby_pad_min) <= 512 else 512
    node_tile = max(256, min(node_tile, _round_up(max(n_sel, 1), 256)))

    def est_vmem(nby_block, k_tile):
        map_blk = nbx_block * nby_block * 4                  # resident accumulator
        attrs = 2 * (8 * k_tile * 4) + 2 * (k_tile * 128 * 4)  # lane-padded in VMEM
        edges = 2 * (2 * nbx_block * 128 * 4 + 2 * 8 * nby_block * 4)
        ox_tmp = 3 * nbx_block * k_tile * 4 + (nbx_block * k_tile * 2 if use_bf16 else 0)
        oy_tmp = 3 * k_tile * nby_block * 4 + (k_tile * nby_block * 2 if use_bf16 else 0)
        return map_blk + attrs + edges + ox_tmp + oy_tmp

    # --- column tiling over nby when the working set would overflow per-TC VMEM ---
    nby_block = nby_pad_min
    while nby_block > 512 and est_vmem(nby_block, node_tile) > budget:
        nby_block = _round_up(nby_block // 2, 128)
    if est_vmem(nby_block, node_tile) > budget and node_tile > 512:
        node_tile = 512
    nby_pad = _round_up(nby_pad_min, nby_block)
    num_col_blocks = nby_pad // nby_block

    nt = pl.cdiv(max(n_sel, 1), node_tile)
    n_pad = nt * node_tile
    pad = n_pad - n_sel

    # padded nodes get zero size -> sf = 0 -> exactly zero contribution
    xs = jnp.pad(xs, (0, pad))
    ys = jnp.pad(ys, (0, pad))
    sx = jnp.pad(sx, (0, pad))
    sy = jnp.pad(sy, (0, pad))

    cx = xs + 0.5 * sx
    cy = ys + 0.5 * sy
    sf = (sf_scale * sx) * sy      # ratio.mul(0.25) / (targetHalfSizeX*targetHalfSizeY)

    zeros = jnp.zeros_like(cx)
    # lane-major x-side attrs: (nt, 8, K); rows 0..2 = cx-hsx, cx+hsx, sf
    attrs_x = jnp.stack([cx - hsx, cx + hsx, sf,
                         zeros, zeros, zeros, zeros, zeros], axis=0)
    attrs_x = attrs_x.reshape(8, nt, node_tile).transpose(1, 0, 2)
    # sublane-major y-side attrs: (nt, K, 8); cols 0..1 = cy-hsy, cy+hsy
    attrs_y = jnp.stack([cy - hsy, cy + hsy,
                         zeros, zeros, zeros, zeros, zeros, zeros], axis=1)
    attrs_y = attrs_y.reshape(nt, node_tile, 8)

    # precomputed bin lower/upper edges (padded bins lie past the die; sliced off
    # below, matching the reference which drops mass outside the real bins)
    bxl_arr = (float(xl) + jnp.arange(nbx_pad, dtype=jnp.float32)
               * float(bin_size_x)).reshape(nbx_pad, 1)
    bxh_arr = bxl_arr + float(bin_size_x)
    byl_arr = (float(yl) + jnp.arange(nby_pad, dtype=jnp.float32)
               * float(bin_size_y)).reshape(1, nby_pad)
    byh_arr = byl_arr + float(bin_size_y)

    est = est_vmem(nby_block, node_tile)
    vmem_limit = int(min(budget, max(est + 8 * _MiB, 16 * _MiB)))

    kernel = functools.partial(_density_kernel, use_bf16=bool(use_bf16))

    dm_nodes = pl.pallas_call(
        kernel,
        out_shape=jax.ShapeDtypeStruct((nbx_pad, nby_pad), jnp.float32),
        grid_spec=pltpu.PrefetchScalarGridSpec(
            num_scalar_prefetch=0,
            grid=(num_row_blocks, num_col_blocks, nt),
            in_specs=[
                pl.BlockSpec((1, 8, node_tile), lambda i, j, k: (k, 0, 0)),
                pl.BlockSpec((1, node_tile, 8), lambda i, j, k: (k, 0, 0)),
                pl.BlockSpec((nbx_block, 1), lambda i, j, k: (i, 0)),
                pl.BlockSpec((nbx_block, 1), lambda i, j, k: (i, 0)),
                pl.BlockSpec((1, nby_block), lambda i, j, k: (0, j)),
                pl.BlockSpec((1, nby_block), lambda i, j, k: (0, j)),
            ],
            out_specs=pl.BlockSpec((nbx_block, nby_block), lambda i, j, k: (i, j)),
        ),
        compiler_params=pltpu.CompilerParams(
            dimension_semantics=("parallel", "parallel", "arbitrary"),
            vmem_limit_bytes=vmem_limit),
    )(attrs_x, attrs_y, bxl_arr, bxh_arr, byl_arr, byh_arr)

    # init map add + reductions stay in XLA (fuse there; keeps kernel footprint low)
    dm = dm_nodes[:nbx, :nby] + initial_density_map
    density_cost = jnp.maximum(dm - thr, 0.0).sum().reshape(1)   # .sum().unsqueeze(0)
    max_density = (jnp.max(dm) / bin_area).reshape(1)            # .max().unsqueeze(0)/bin_area
    return density_cost, max_density, dm


def _reference_forward(pos, node_size_x, node_size_y, initial_density_map, *,
                       xl, yl, xh, yh, bin_size_x, bin_size_y,
                       num_movable_nodes, num_filler_nodes,
                       target_density, stretch_ratio):
    """Pure-JAX dense reference of the same semantics."""
    num_nodes = node_size_x.shape[0]
    nbx = int(math.ceil((xh - xl) / bin_size_x))
    nby = int(math.ceil((yh - yl) / bin_size_y))
    hsx = 0.5 * stretch_ratio * bin_size_x
    hsy = 0.5 * stretch_ratio * bin_size_y
    bin_area = bin_size_x * bin_size_y

    x = pos[:num_nodes]
    y = pos[num_nodes:]
    sel = np.concatenate([np.arange(num_movable_nodes),
                          np.arange(num_nodes - num_filler_nodes, num_nodes)])
    cx = x[sel] + 0.5 * node_size_x[sel]
    cy = y[sel] + 0.5 * node_size_y[sel]
    sf = 0.25 * node_size_x[sel] * node_size_y[sel] / (hsx * hsy)

    bin_xl = xl + jnp.arange(nbx, dtype=jnp.float32) * bin_size_x
    bin_yl = yl + jnp.arange(nby, dtype=jnp.float32) * bin_size_y
    ox = jnp.maximum(jnp.minimum(cx[:, None] + hsx, bin_xl[None, :] + bin_size_x)
                     - jnp.maximum(cx[:, None] - hsx, bin_xl[None, :]), 0.0)
    oy = jnp.maximum(jnp.minimum(cy[:, None] + hsy, bin_yl[None, :] + bin_size_y)
                     - jnp.maximum(cy[:, None] - hsy, bin_yl[None, :]), 0.0)
    dm = initial_density_map + (ox * sf[:, None]).T @ oy
    cost = jnp.maximum(dm - target_density * bin_area, 0.0).sum().reshape(1)
    mx = (dm.max() / bin_area).reshape(1)
    return cost, mx, dm


if __name__ == "__main__":
    def build_case(key, num_movable, num_terminals, num_filler,
                   xl, yl, xh, yh, bin_size_x, bin_size_y, target_density):
        num_nodes = num_movable + num_terminals + num_filler
        k1, k2, k3, k4, k5 = jax.random.split(key, 5)
        node_size_x = jax.random.uniform(k1, (num_nodes,), jnp.float32, 0.5, 1.5)
        node_size_y = jax.random.uniform(k2, (num_nodes,), jnp.float32, 0.5, 1.5)
        xs = jax.random.uniform(k3, (num_nodes,), jnp.float32, xl, xh - 1.5)
        ys = jax.random.uniform(k4, (num_nodes,), jnp.float32, yl, yh - 1.5)
        pos = jnp.concatenate([xs, ys])   # flat: x then y
        nbx = int(math.ceil((xh - xl) / bin_size_x))
        nby = int(math.ceil((yh - yl) / bin_size_y))
        init = jax.random.uniform(k5, (nbx, nby), jnp.float32, 0.0, 0.2)
        params = dict(xl=xl, yl=yl, xh=xh, yh=yh,
                      bin_size_x=bin_size_x, bin_size_y=bin_size_y,
                      num_movable_nodes=num_movable, num_filler_nodes=num_filler,
                      target_density=target_density,
                      stretch_ratio=math.sqrt(2.0))
        return pos, node_size_x, node_size_y, init, params

    key = jax.random.PRNGKey(0)
    k_a, k_b = jax.random.split(key)

    # case A: 16x16 bins, 96 movable + 16 terminals + 64 filler (single node tile)
    case_a = build_case(k_a, 96, 16, 64, 0.0, 0.0, 16.0, 16.0, 1.0, 1.0, 0.8)
    # case B: 40x24 bins, 800 movable + 32 terminals + 400 filler (nt > 1 -> exercises
    # the accumulator reset/accumulate path across the reduction grid axis)
    case_b = build_case(k_b, 800, 32, 400, 0.0, 0.0, 40.0, 24.0, 1.0, 1.0, 0.8)

    for name, (pos, nsx, nsy, init, params) in (("A", case_a), ("B", case_b)):
        ref_cost, ref_max, ref_dm = _reference_forward(pos, nsx, nsy, init, **params)

        # exact f32 MXU path
        cost32, max32, dm32 = electric_overflow_forward(
            pos, nsx, nsy, init, use_bf16=False, **params)
        jax.block_until_ready((cost32, max32, dm32))
        np.testing.assert_allclose(np.asarray(dm32), np.asarray(ref_dm),
                                   rtol=1e-5, atol=5e-5)
        np.testing.assert_allclose(np.asarray(cost32), np.asarray(ref_cost),
                                   rtol=1e-5, atol=1e-2)
        np.testing.assert_allclose(np.asarray(max32), np.asarray(ref_max),
                                   rtol=1e-5, atol=1e-5)

        # fast bf16-input MXU path (f32 accumulation) — looser tolerance by design
        cost16, max16, dm16 = electric_overflow_forward(
            pos, nsx, nsy, init, use_bf16=True, **params)
        jax.block_until_ready((cost16, max16, dm16))
        np.testing.assert_allclose(np.asarray(dm16), np.asarray(ref_dm),
                                   rtol=2e-2, atol=5e-2)
        np.testing.assert_allclose(np.asarray(cost16), np.asarray(ref_cost),
                                   rtol=4e-2, atol=3.0)
        np.testing.assert_allclose(np.asarray(max16), np.asarray(ref_max),
                                   rtol=2e-2, atol=2e-2)

    print("KERNEL_OK")
</pallas_src>

<mosaic_0001>
module attributes {stable_mosaic.version = 11 : i64} {
  func.func @_density_kernel(%arg0: i32, %arg1: i32, %arg2: i32, %arg3: memref<1x8x256xf32, #tpu.memory_space<vmem>>, %arg4: memref<1x256x8xf32, #tpu.memory_space<vmem>>, %arg5: memref<16x1xf32, #tpu.memory_space<vmem>>, %arg6: memref<16x1xf32, #tpu.memory_space<vmem>>, %arg7: memref<1x128xf32, #tpu.memory_space<vmem>>, %arg8: memref<1x128xf32, #tpu.memory_space<vmem>>, %arg9: memref<16x128xf32, #tpu.memory_space<vmem>>) attributes {dimension_semantics = [#tpu.dimension_semantics<parallel>, #tpu.dimension_semantics<parallel>, #tpu.dimension_semantics<arbitrary>], iteration_bounds = array<i64: 1, 1, 1>, scalar_prefetch = 0 : i64, scratch_operands = 0 : i64, tpu.core_type = #tpu.core_type<tc>, window_params = [{transform_indices = @transform_0, window_bounds = array<i64: 1, 8, 256>}, {transform_indices = @transform_1, window_bounds = array<i64: 1, 256, 8>}, {transform_indices = @transform_2, window_bounds = array<i64: 16, 1>}, {transform_indices = @transform_3, window_bounds = array<i64: 16, 1>}, {transform_indices = @transform_4, window_bounds = array<i64: 1, 128>}, {transform_indices = @transform_5, window_bounds = array<i64: 1, 128>}, {transform_indices = @transform_6, window_bounds = array<i64: 16, 128>}]} {
    %c0_i32 = arith.constant 0 : i32
    %0 = arith.cmpi eq, %arg2, %c0_i32 : i32
    %1 = arith.extui %0 : i1 to i32
    %c0_i32_0 = arith.constant 0 : i32
    %2 = arith.cmpi ne, %1, %c0_i32_0 : i32
    scf.if %2 {
      %cst_20 = arith.constant 0.000000e+00 : f32
      %46 = vector.broadcast %cst_20 : f32 to vector<16x128xf32>
      %c0_21 = arith.constant 0 : index
      %c0_22 = arith.constant 0 : index
      %47 = vector.load %arg9[%c0_21, %c0_22] : memref<16x128xf32, #tpu.memory_space<vmem>>, vector<16x128xf32>
      tpu.vector_store %arg9[%c0_21, %c0_22], %46 {strides = array<i32>} : memref<16x128xf32, #tpu.memory_space<vmem>>, vector<16x128xf32>,
    } else {
    }
    %c0 = arith.constant 0 : index
    %c0_1 = arith.constant 0 : index
    %c0_2 = arith.constant 0 : index
    %3 = vector.load %arg3[%c0, %c0_1, %c0_2] : memref<1x8x256xf32, #tpu.memory_space<vmem>>, vector<1x8x256xf32>
    %4 = vector.shape_cast %3 : vector<1x8x256xf32> to vector<8x256xf32>
    %5 = vector.extract_strided_slice %4 {offsets = [0, 0], sizes = [1, 256], strides = [1, 1]} : vector<8x256xf32> to vector<1x256xf32>
    %6 = vector.shape_cast %5 : vector<1x256xf32> to vector<256xf32>
    %7 = vector.extract_strided_slice %4 {offsets = [1, 0], sizes = [1, 256], strides = [1, 1]} : vector<8x256xf32> to vector<1x256xf32>
    %8 = vector.shape_cast %7 : vector<1x256xf32> to vector<256xf32>
    %9 = vector.extract_strided_slice %4 {offsets = [2, 0], sizes = [1, 256], strides = [1, 1]} : vector<8x256xf32> to vector<1x256xf32>
    %10 = vector.shape_cast %9 : vector<1x256xf32> to vector<256xf32>
    %c0_3 = arith.constant 0 : index
    %c0_4 = arith.constant 0 : index
    %c0_5 = arith.constant 0 : index
    %11 = vector.load %arg4[%c0_3, %c0_4, %c0_5] : memref<1x256x8xf32, #tpu.memory_space<vmem>>, vector<1x256x8xf32>
    %12 = vector.shape_cast %11 : vector<1x256x8xf32> to vector<256x8xf32>
    %13 = vector.extract_strided_slice %12 {offsets = [0, 0], sizes = [256, 1], strides = [1, 1]} : vector<256x8xf32> to vector<256x1xf32>
    %14 = vector.extract_strided_slice %12 {offsets = [0, 1], sizes = [256, 1], strides = [1, 1]} : vector<256x8xf32> to vector<256x1xf32>
    %c0_6 = arith.constant 0 : index
    %c0_7 = arith.constant 0 : index
    %15 = vector.load %arg5[%c0_6, %c0_7] : memref<16x1xf32, #tpu.memory_space<vmem>>, vector<16x1xf32>
    %c0_8 = arith.constant 0 : index
    %c0_9 = arith.constant 0 : index
    %16 = vector.load %arg6[%c0_8, %c0_9] : memref<16x1xf32, #tpu.memory_space<vmem>>, vector<16x1xf32>
    %c0_10 = arith.constant 0 : index
    %c0_11 = arith.constant 0 : index
    %17 = vector.load %arg7[%c0_10, %c0_11] : memref<1x128xf32, #tpu.memory_space<vmem>>, vector<1x128xf32>
    %c0_12 = arith.constant 0 : index
    %c0_13 = arith.constant 0 : index
    %18 = vector.load %arg8[%c0_12, %c0_13] : memref<1x128xf32, #tpu.memory_space<vmem>>, vector<1x128xf32>
    %19 = vector.shape_cast %8 : vector<256xf32> to vector<1x256xf32>
    %20 = vector.broadcast %19 : vector<1x256xf32> to vector<16x256xf32>
    %21 = vector.broadcast %16 : vector<16x1xf32> to vector<16x256xf32>
    %22 = arith.minimumf %20, %21 : vector<16x256xf32>
    %23 = vector.shape_cast %6 : vector<256xf32> to vector<1x256xf32>
    %24 = vector.broadcast %23 : vector<1x256xf32> to vector<16x256xf32>
    %25 = vector.broadcast %15 : vector<16x1xf32> to vector<16x256xf32>
    %26 = arith.maximumf %24, %25 : vector<16x256xf32>
    %27 = arith.subf %22, %26 : vector<16x256xf32>
    %cst = arith.constant 0.000000e+00 : f32
    %28 = vector.broadcast %cst : f32 to vector<16x256xf32>
    %29 = arith.maximumf %27, %28 : vector<16x256xf32>
    %30 = vector.shape_cast %10 : vector<256xf32> to vector<1x256xf32>
    %31 = vector.broadcast %30 : vector<1x256xf32> to vector<16x256xf32>
    %32 = arith.mulf %29, %31 : vector<16x256xf32>
    %33 = vector.broadcast %14 : vector<256x1xf32> to vector<256x128xf32>
    %34 = vector.broadcast %18 : vector<1x128xf32> to vector<256x128xf32>
    %35 = arith.minimumf %33, %34 : vector<256x128xf32>
    %36 = vector.broadcast %13 : vector<256x1xf32> to vector<256x128xf32>
    %37 = vector.broadcast %17 : vector<1x128xf32> to vector<256x128xf32>
    %38 = arith.maximumf %36, %37 : vector<256x128xf32>
    %39 = arith.subf %35, %38 : vector<256x128xf32>
    %cst_14 = arith.constant 0.000000e+00 : f32
    %40 = vector.broadcast %cst_14 : f32 to vector<256x128xf32>
    %41 = arith.maximumf %39, %40 : vector<256x128xf32>
    %c0_15 = arith.constant 0 : index
    %c0_16 = arith.constant 0 : index
    %42 = vector.load %arg9[%c0_15, %c0_16] : memref<16x128xf32, #tpu.memory_space<vmem>>, vector<16x128xf32>
    %cst_17 = arith.constant dense<0.000000e+00> : vector<16x128xf32>
    %43 = tpu.matmul %32, %41, %cst_17 {dimension_numbers = #tpu.dot_dimension_numbers<[1], [0], [0], [1], [0, 0, 1, 1], [], []>} : vector<16x256xf32>, vector<256x128xf32>, vector<16x128xf32> -> vector<16x128xf32>
    %44 = arith.addf %42, %43 : vector<16x128xf32>
    %c0_18 = arith.constant 0 : index
    %c0_19 = arith.constant 0 : index
    %45 = vector.load %arg9[%c0_18, %c0_19] : memref<16x128xf32, #tpu.memory_space<vmem>>, vector<16x128xf32>
    tpu.vector_store %arg9[%c0_18, %c0_19], %44 {strides = array<i32>} : memref<16x128xf32, #tpu.memory_space<vmem>>, vector<16x128xf32>,
    return
  }
  func.func @transform_0(%arg0: i32, %arg1: i32, %arg2: i32) -> (i32, i32, i32) {
    %c0_i32 = arith.constant 0 : i32
    %c0_i32_0 = arith.constant 0 : i32
    %c0_i32_1 = arith.constant 0 : i32
    return %arg2, %c0_i32, %c0_i32_0 : i32, i32, i32
  }
  func.func @transform_1(%arg0: i32, %arg1: i32, %arg2: i32) -> (i32, i32, i32) {
    %c0_i32 = arith.constant 0 : i32
    %c0_i32_0 = arith.constant 0 : i32
    %c0_i32_1 = arith.constant 0 : i32
    return %arg2, %c0_i32, %c0_i32_0 : i32, i32, i32
  }
  func.func @transform_2(%arg0: i32, %arg1: i32, %arg2: i32) -> (i32, i32) {
    %c0_i32 = arith.constant 0 : i32
    %c0_i32_0 = arith.constant 0 : i32
    return %arg0, %c0_i32 : i32, i32
  }
  func.func @transform_3(%arg0: i32, %arg1: i32, %arg2: i32) -> (i32, i32) {
    %c0_i32 = arith.constant 0 : i32
    %c0_i32_0 = arith.constant 0 : i32
    return %arg0, %c0_i32 : i32, i32
  }
  func.func @transform_4(%arg0: i32, %arg1: i32, %arg2: i32) -> (i32, i32) {
    %c0_i32 = arith.constant 0 : i32
    %c0_i32_0 = arith.constant 0 : i32
    return %c0_i32, %arg1 : i32, i32
  }
  func.func @transform_5(%arg0: i32, %arg1: i32, %arg2: i32) -> (i32, i32) {
    %c0_i32 = arith.constant 0 : i32
    %c0_i32_0 = arith.constant 0 : i32
    return %c0_i32, %arg1 : i32, i32
  }
  func.func @transform_6(%arg0: i32, %arg1: i32, %arg2: i32) -> (i32, i32) {
    %c0_i32 = arith.constant 0 : i32
    return %arg0, %arg1 : i32, i32
  }
}

</mosaic_0001>

<bundles_post_ra>
// kernel: tpu_custom_call.1
= control target key start
LH: loop header
LB: loop body
LE: loop exit
PB: predicated region body
PF: predicated region fallthrough
CT: control target
= control target key end

     0   :  { %v810_v1 = vmov 1   ;;  %v811_v2 = vmov 0   ;;  %s1175_s0 = inlined_call_operand.vmem [shape: f32[1,8,256], index: 0, kind: input, shape index: {}]   ;;  %s1176_s1 = inlined_call_operand.vmem [shape: f32[1,256,8], index: 1, kind: input, shape index: {}]   ;;  %s1177_s2 = inlined_call_operand.vmem [shape: f32[16,1], index: 2, kind: input, shape index: {}]   ;;  %s1178_s3 = inlined_call_operand.vmem [shape: f32[16,1], index: 3, kind: input, shape index: {}]   ;;  %s1179_s4 = inlined_call_operand.vmem [shape: f32[1,128], index: 4, kind: input, shape index: {}]   ;;  %s1180_s5 = inlined_call_operand.vmem [shape: f32[1,128], index: 5, kind: input, shape index: {}]   ;;  %s1181_s6 = inlined_call_operand.hbm [shape: f32[16,128], index: 6, kind: output, shape index: {}]  }
   0x1   :  { %v48_v0 = vld [vmem:[%s1176_s1 + $0x80] sm:$0xff]  ;;  %753 = vset.pattern.permute.xlu0 %v810_v1  ;;  %754 = vset.pattern.permute.xlu1 %v811_v2  ;;  %v49_v3 = vld [vmem:[%s1176_s1 + $0x88] sm:$0xff] }
   0x2   :  { %397 = vperm.xlu1 %754, %v48_v0   ;;  %216 = vperm.xlu0 %753, %v48_v0   ;;  %v32_v4 = vld [vmem:[%s1176_s1] sm:$0xff]  ;;  %v33_v5 = vld [vmem:[%s1176_s1 + $0x8] sm:$0xff] }
   0x6   :  { %401 = vperm.xlu1 %754, %v49_v3   ;;  %221 = vperm.xlu0 %753, %v49_v3  }
   0xa   :  { %755 = vset.pattern.permute.xlu1 %v810_v1  ;;  %136 = vperm.xlu0 %753, %v32_v4  }
   0xb   :  { %11 = vsyncpa [#allocation3], 0  ;;  %141 = vperm.xlu1 %755, %v33_v5   ;;  %v51_v6 = vld [vmem:[%s1176_s1 + $0x98] sm:$0xff]  ;;  %v34_v7 = vld [vmem:[%s1176_s1 + $0x10] sm:$0xff] }
   0xc   :  { %v50_v8 = vld [vmem:[%s1176_s1 + $0x90] sm:$0xff]  ;;  %v53_v9 = vld [vmem:[%s1176_s1 + $0xa8] sm:$0xff]  ;;  %v36_v10 = vld [vmem:[%s1176_s1 + $0x20] sm:$0xff] }
   0xd   :  { %v55_v11 = vld [vmem:[%s1176_s1 + $0xb8] sm:$0xff]  ;;  %v38_v12 = vld [vmem:[%s1176_s1 + $0x30] sm:$0xff]  ;;  %v57_v14 = vld [vmem:[%s1176_s1 + $0xc8] sm:$0xff] }
   0xe   :  { %231 = vperm.xlu0 %753, %v51_v6   ;;  %v35_v13 = vld [vmem:[%s1176_s1 + $0x18] sm:$0xff]  ;;  %v40_v15 = vld [vmem:[%s1176_s1 + $0x40] sm:$0xff]  ;;  %v42_v18 = vld [vmem:[%s1176_s1 + $0x50] sm:$0xff] }
   0xf   :  { %756 = vset.pattern.permute.xlu1 %v811_v2  ;;  %v52_v16 = vld [vmem:[%s1176_s1 + $0xa0] sm:$0xff]  ;;  %v59_v17 = vld [vmem:[%s1176_s1 + $0xd8] sm:$0xff]  ;;  %v914_v19 = vld [vmem:[%s1176_s1 + $0xe8] sm:$0xff] }
  0x10   :  { %337 = vperm.xlu1 %756, %v33_v5   ;;  %v44_v20 = vld [vmem:[%s1176_s1 + $0x60] sm:$0xff]  ;;  %v37_v21 = vld [vmem:[%s1176_s1 + $0x28] sm:$0xff]  ;;  %v927_v22 = vld [vmem:[%s1176_s1 + $0xf8] sm:$0xff] }
  0x11   :  { %v46_v23 = vld [vmem:[%s1176_s1 + $0x70] sm:$0xff]  ;;  %v39_v25 = vld [vmem:[%s1176_s1 + $0x38] sm:$0xff]  ;;  %v56_v26 = vld [vmem:[%s1176_s1 + $0xc0] sm:$0xff] }
  0x12   :  { %146 = vperm.xlu0 %753, %v34_v7   ;;  %v54_v24 = vld [vmem:[%s1176_s1 + $0xb0] sm:$0xff]  ;;  %v67_v27 = vld [vmem:[%s1178_s3 + $0x8] sm:$0xff]  ;;  %v969_v31 = vld [vmem:[%s1179_s4] ss:$0 sm:$0xff] }
  0x13   :  { %v41_v28 = vld [vmem:[%s1176_s1 + $0x48] sm:$0xff]  ;;  %v58_v30 = vld [vmem:[%s1176_s1 + $0xd0] sm:$0xff]  ;;  %v974_v32 = vld [vmem:[%s1180_s5] ss:$0 sm:$0xff] }
  0x14   :  { %757 = vset.pattern.permute.xlu1 %v810_v1  ;;  %v65_v29 = vld [vmem:[%s1177_s2 + $0x8] sm:$0xff]  ;;  %v43_v33 = vld [vmem:[%s1176_s1 + $0x58] sm:$0xff]  ;;  %v60_v48 = vld [vmem:[%s1176_s1 + $0xe0] sm:$0xff] }
  0x15   :  { %226 = vperm.xlu1 %757, %v50_v8   ;;  %v45_v55 = vld [vmem:[%s1176_s1 + $0x68] sm:$0xff]  ;;  %v62_v62 = vld [vmem:[%s1176_s1 + $0xf0] sm:$0xff] }
  0x16   :  { %241 = vperm.xlu0 %753, %v53_v9  }
  0x19   :  { %758 = vset.pattern.permute.xlu1 %v811_v2 }
  0x1a   :  { %405 = vperm.xlu1 %758, %v50_v8   ;;  %156 = vperm.xlu0 %753, %v36_v10  }
  0x1e   :  { %409 = vperm.xlu1 %758, %v51_v6   ;;  %251 = vperm.xlu0 %753, %v55_v11   ;;  %v47_v6 = vld [vmem:[%s1176_s1 + $0x78] sm:$0xff] }
  0x22   :  { %759 = vset.pattern.permute.xlu1 %v810_v1  ;;  %166 = vperm.xlu0 %753, %v38_v12  }
  0x23   :  { %151 = vperm.xlu1 %759, %v35_v13  }
  0x26   :  { %261 = vperm.xlu0 %753, %v57_v14  }
  0x27   :  { %760 = vset.pattern.permute.xlu1 %v811_v2 }
  0x28   :  { %345 = vperm.xlu1 %760, %v35_v13  }
  0x2a   :  { %176 = vperm.xlu0 %753, %v40_v15  }
  0x2c   :  { %761 = vset.pattern.permute.xlu1 %v810_v1 }
  0x2d   :  { %236 = vperm.xlu1 %761, %v52_v16  }
  0x2e   :  { %271 = vperm.xlu0 %753, %v59_v17  }
  0x31   :  { %762 = vset.pattern.permute.xlu1 %v811_v2 }
  0x32   :  { %413 = vperm.xlu1 %762, %v52_v16   ;;  %186 = vperm.xlu0 %753, %v42_v18  }
  0x36   :  { %417 = vperm.xlu1 %762, %v53_v9   ;;  %281 = vperm.xlu0 %753, %v914_v19  }
  0x3a   :  { %763 = vset.pattern.permute.xlu1 %v810_v1  ;;  %196 = vperm.xlu0 %753, %v44_v20  }
  0x3b   :  { %161 = vperm.xlu1 %763, %v37_v21  }
  0x3e   :  { %291 = vperm.xlu0 %753, %v927_v22  }
  0x3f   :  { %764 = vset.pattern.permute.xlu1 %v811_v2 }
  0x40   :  { %353 = vperm.xlu1 %764, %v37_v21  }
  0x42   :  { %206 = vperm.xlu0 %753, %v46_v23  }
  0x44   :  { %765 = vset.pattern.permute.xlu1 %v810_v1 }
  0x45   :  { %246 = vperm.xlu1 %765, %v54_v24  }
  0x46   :  { %783 = vset.pattern.permute.xlu0 %v811_v2 }
  0x47   :  { %333 = vperm.xlu0 %783, %v32_v4  }
  0x49   :  { %766 = vset.pattern.permute.xlu1 %v811_v2 }
  0x4a   :  { %421 = vperm.xlu1 %766, %v54_v24  }
  0x4b   :  { %341 = vperm.xlu0 %783, %v34_v7  }
  0x4e   :  { %425 = vperm.xlu1 %766, %v55_v11  }
  0x4f   :  { %349 = vperm.xlu0 %783, %v36_v10  }
  0x52   :  { %767 = vset.pattern.permute.xlu1 %v810_v1 }
  0x53   :  { %171 = vperm.xlu1 %767, %v39_v25   ;;  %357 = vperm.xlu0 %783, %v38_v12   ;;  %v66_v12 = vld [vmem:[%s1178_s3] sm:$0xff] }
  0x57   :  { %768 = vset.pattern.permute.xlu1 %v811_v2  ;;  %365 = vperm.xlu0 %783, %v40_v15  }
  0x58   :  { %361 = vperm.xlu1 %768, %v39_v25  }
  0x5b   :  { %373 = vperm.xlu0 %783, %v42_v18  }
  0x5c   :  { %769 = vset.pattern.permute.xlu1 %v810_v1 }
  0x5d   :  { %256 = vperm.xlu1 %769, %v56_v26  }
  0x5f   :  { %381 = vperm.xlu0 %783, %v44_v20  }
  0x61   :  { %770 = vset.pattern.permute.xlu1 %v811_v2 }
  0x62   :  { %429 = vperm.xlu1 %770, %v56_v26  }
  0x63   :  { %389 = vperm.xlu0 %783, %v46_v23  }
  0x66   :  { %433 = vperm.xlu1 %770, %v57_v14  }
  0x67   :  { %85 = vperm.xlu0 %783, %v67_v27  }
  0x6a   :  { %771 = vset.pattern.permute.xlu1 %v810_v1 }
  0x6b   :  { %181 = vperm.xlu1 %771, %v41_v28   ;;  %107 = vperm.xlu0 %783, %v65_v29  }
  0x6f   :  { %772 = vset.pattern.permute.xlu1 %v811_v2 }
  0x70   :  { %369 = vperm.xlu1 %772, %v41_v28  }
  0x74   :  { %773 = vset.pattern.permute.xlu1 %v810_v1 }
  0x75   :  { %266 = vperm.xlu1 %773, %v58_v30  }
  0x79   :  { %774 = vset.pattern.permute.xlu1 %v811_v2 }
  0x7a   :  { %437 = vperm.xlu1 %774, %v58_v30  }
  0x7e   :  { %441 = vperm.xlu1 %774, %v59_v17  }
  0x81   :  { %v398_v34 = vpop.permute.xlu1 %397  ;;  %v217_v35 = vpop.permute.xlu0 %216 }
  0x82   :  { %v482_v36 = vmax.f32 %v398_v34, %v969_v31  ;;  %v316_v37 = vmin.f32 %v217_v35, %v974_v32  ;;  %775 = vset.pattern.permute.xlu1 %v810_v1 }
  0x83   :  { %191 = vperm.xlu1 %775, %v43_v33  }
  0x84   :  { %v514_v40 = vsub.f32 %v316_v37, %v482_v36 }
  0x85   :  { %v402_v38 = vpop.permute.xlu1 %401  ;;  %v222_v39 = vpop.permute.xlu0 %221 }
  0x86   :  { %v483_v41 = vmax.f32 %v402_v38, %v969_v31  ;;  %v317_v42 = vmin.f32 %v222_v39, %v974_v32  ;;  %v546_v45 = vmax.f32 %v514_v40, 0.0 }
  0x87   :  { %776 = vset.pattern.permute.xlu1 %v811_v2 }
  0x88   :  { %v515_v43 = vsub.f32 %v317_v42, %v483_v41  ;;  %377 = vperm.xlu1 %776, %v43_v33  }
  0x89   :  { %v985_v44 = vpop.permute.xlu0 %136 }
  0x8a   :  { %v547_v46 = vmax.f32 %v515_v43, 0.0  ;;  %v987_v47 = vpop.permute.xlu1 %141 }
  0x8c   :  { %777 = vset.pattern.permute.xlu1 %v810_v1  ;;  %v699_v49 = vpack.c.bf16 %v547_v46, %v546_v45 }
  0x8d   :  { %276 = vperm.xlu1 %777, %v60_v48   ;;  %v232_v50 = vpop.permute.xlu0 %231 }
  0x8e   :  { %700 = vmatprep.subr.bf16.mxu0 %v699_v49  ;;  %731 = vmatprep.subr.bf16.mxu1 %v699_v49  ;;  %v319_v17 = vmin.f32 %v232_v50, %v974_v32 }
  0x8f   :  { %v338_v51 = vpop.permute.xlu1 %337 }
  0x90   :  { %v467_v16 = vmax.f32 %v338_v51, %v969_v31 }
  0x91   :  { %778 = vset.pattern.permute.xlu1 %v811_v2  ;;  %v994_v52 = vpop.permute.xlu0 %146 }
  0x92   :  { %445 = vperm.xlu1 %778, %v60_v48   ;;  %v302_v35 = vmin.f32 %v994_v52, %v974_v32 }
  0x94   :  { %v227_v53 = vpop.permute.xlu1 %226 }
  0x95   :  { %v996_v54 = vpop.permute.xlu0 %241  ;;  %v318_v24 = vmin.f32 %v227_v53, %v974_v32 }
  0x96   :  { %449 = vperm.xlu1 %778, %v914_v19   ;;  %v301_v19 = vmin.f32 %v987_v47, %v974_v32  ;;  %v321_v25 = vmin.f32 %v996_v54, %v974_v32 }
  0x98   :  { %v499_v23 = vsub.f32 %v301_v19, %v467_v16 }
  0x99   :  { %v406_v56 = vpop.permute.xlu1 %405  ;;  %v1002_v57 = vpop.permute.xlu0 %156 }
  0x9a   :  { %779 = vset.pattern.permute.xlu1 %v810_v1  ;;  %v484_v20 = vmax.f32 %v406_v56, %v969_v31  ;;  %v531_v39 = vmax.f32 %v499_v23, 0.0  ;;  %v304_v52 = vmin.f32 %v1002_v57, %v974_v32 }
  0x9b   :  { %201 = vperm.xlu1 %779, %v45_v55  }
  0x9c   :  { %v516_v33 = vsub.f32 %v318_v24, %v484_v20 }
  0x9d   :  { %v410_v58 = vpop.permute.xlu1 %409  ;;  %v1005_v59 = vpop.permute.xlu0 %251 }
  0x9e   :  { %v485_v18 = vmax.f32 %v410_v58, %v969_v31  ;;  %v548_v48 = vmax.f32 %v516_v33, 0.0  ;;  %v323_v49 = vmin.f32 %v1005_v59, %v974_v32 }
  0x9f   :  { %780 = vset.pattern.permute.xlu1 %v811_v2 }
  0xa0   :  { %385 = vperm.xlu1 %780, %v45_v55   ;;  %v517_v26 = vsub.f32 %v319_v17, %v485_v18 }
  0xa1   :  { %v1008_v60 = vpop.permute.xlu0 %166 }
  0xa2   :  { %v152_v61 = vpop.permute.xlu1 %151  ;;  %v549_v40 = vmax.f32 %v517_v26, 0.0  ;;  %v306_v16 = vmin.f32 %v1008_v60, %v974_v32  ;;  %v70_v60 = vlaneseq }
  0xa3   :  { %v303_v36 = vmin.f32 %v152_v61, %v974_v32 }
  0xa4   :  { %781 = vset.pattern.permute.xlu1 %v810_v1 }
  0xa5   :  { %286 = vperm.xlu1 %781, %v62_v62   ;;  %v1014_v63 = vpop.permute.xlu0 %261 }
  0xa7   :  { %v346_v0 = vpop.permute.xlu1 %345 }
  0xa8   :  { %v469_v29 = vmax.f32 %v346_v0, %v969_v31 }
  0xa9   :  { %782 = vset.pattern.permute.xlu1 %v811_v2  ;;  %v1017_v3 = vpop.permute.xlu0 %176 }
  0xaa   :  { %453 = vperm.xlu1 %782, %v62_v62  }
  0xac   :  { %v237_v4 = vpop.permute.xlu1 %236 }
  0xad   :  { %v1019_v5 = vpop.permute.xlu0 %271  ;;  %v320_v41 = vmin.f32 %v237_v4, %v974_v32  ;;  %v703_v4 = vpack.c.bf16 %v549_v40, %v548_v48 }
  0xae   :  { %457 = vperm.xlu1 %782, %v927_v22   ;;  %v300_v22 = vmin.f32 %v985_v44, %v974_v32  ;;  %v501_v44 = vsub.f32 %v303_v36, %v469_v29 }
  0xb1   :  { %v414_v7 = vpop.permute.xlu1 %413  ;;  %v1025_v8 = vpop.permute.xlu0 %186 }
  0xb2   :  { %784 = vset.pattern.permute.xlu1 %v810_v1  ;;  %v64_v1 = vld [vmem:[%s1177_s2] sm:$0xff]  ;;  %v486_v34 = vmax.f32 %v414_v7, %v969_v31 }
  0xb3   :  { %211 = vperm.xlu1 %784, %v47_v6  }
  0xb4   :  { %v518_v50 = vsub.f32 %v320_v41, %v486_v34 }
  0xb5   :  { %v418_v9 = vpop.permute.xlu1 %417  ;;  %v1028_v10 = vpop.permute.xlu0 %281 }
  0xb6   :  { %v487_v27 = vmax.f32 %v418_v9, %v969_v31  ;;  %v550_v57 = vmax.f32 %v518_v50, 0.0  ;;  %v31_v50 = vld [vmem:[%s1175_s0 + $0x8] sm:$0xff] }
  0xb7   :  { %785 = vset.pattern.permute.xlu1 %v811_v2 }
  0xb8   :  { %393 = vperm.xlu1 %785, %v47_v6   ;;  %v519_v42 = vsub.f32 %v321_v25, %v487_v27  ;;  %v533_v6 = vmax.f32 %v501_v44, 0.0 }
  0xb9   :  { %v1031_v11 = vpop.permute.xlu0 %196 }
  0xba   :  { %v162_v13 = vpop.permute.xlu1 %161  ;;  %v551_v58 = vmax.f32 %v519_v42, 0.0  ;;  %v312_v42 = vmin.f32 %v1031_v11, %v974_v32 }
  0xbb   :  { %v305_v53 = vmin.f32 %v162_v13, %v974_v32 }
  0xbc   :  { %80 = vperm.xlu1 %785, %v66_v12   ;;  %v707_v20 = vpack.c.bf16 %v551_v58, %v550_v57 }
  0xbd   :  { %v1036_v14 = vpop.permute.xlu0 %291 }
  0xbf   :  { %v354_v15 = vpop.permute.xlu1 %353 }
  0xc0   :  { %102 = vperm.xlu1 %785, %v64_v1   ;;  %v471_v45 = vmax.f32 %v354_v15, %v969_v31 }
  0xc1   :  { %v1042_v2 = vpop.permute.xlu0 %206 }
  0xc2   :  { %v503_v59 = vsub.f32 %v305_v53, %v471_v45  ;;  %v30_v45 = vld [vmem:[%s1175_s0] sm:$0xff]  ;;  %v314_v11 = vmin.f32 %v1042_v2, %v974_v32  ;;  %s812_s0 = smov [#allocation2]  }
  0xc3   :  { %s648_s24 = sshll.u32 %s812_s0, 4  ;;  %s649_s24 = int_to_ptr.vmem [resolvable:$true] %s648_s24 }
  0xc4   :  { %v247_v21 = vpop.permute.xlu1 %246  ;;  %s786_s25 = scalar_lea.vmem %s649_s24, 256  ;;  %p791_p1 = scmp.lt.s32.totalorder %s649_s24, %s649_s24 }
  0xc5   :  { %v322_v61 = vmin.f32 %v247_v21, %v974_v32  ;;  %v535_v21 = vmax.f32 %v503_v59, 0.0  ;;  %p787_p0 = scmp.ne.s32.totalorder %s649_s24, %s786_s25  ;;  %p792_p2 = scmp.lt.s32.totalorder %s786_s25, %s786_s25 }
  0xc6   :  { %v334_v28 = vpop.permute.xlu0 %333 }
  0xc7   :  { %v466_v30 = vmax.f32 %v334_v28, %v969_v31  ;;  %p793_p3 = por %p792_p2, %p791_p1 }
  0xc9   :  { %v498_v37 = vsub.f32 %v300_v22, %v466_v30  ;;  %v422_v38 = vpop.permute.xlu1 %421  ;;  %p794_p4 = pnand %p793_p3, %p787_p0 }
  0xca   :  { %v342_v43 = vpop.permute.xlu0 %341  ;;  %v488_v51 = vmax.f32 %v422_v38, %v969_v31 }
  0xcb   :  { %v530_v46 = vmax.f32 %v498_v37, 0.0  ;;  %v468_v47 = vmax.f32 %v342_v43, %v969_v31  ;;  %v71_v37 = vshrl.u32 %v70_v60, 7 }
  0xcc   :  { %v520_v12 = vsub.f32 %v322_v61, %v488_v51  ;;  %v325_v61 = vmin.f32 %v1014_v63, %v974_v32 }
  0xcd   :  { %v500_v54 = vsub.f32 %v302_v35, %v468_v47  ;;  %v426_v55 = vpop.permute.xlu1 %425  ;;  %v701_v56 = vpack.c.bf16 %v531_v39, %v530_v46  ;;  %v72_v44 = vsub.s32 1, %v71_v37  ;;  %v94_v53 = vsub.s32 0, %v71_v37 }
  0xce   :  { %v489_v62 = vmax.f32 %v426_v55, %v969_v31  ;;  %v350_v0 = vpop.permute.xlu0 %349  ;;  %v552_v24 = vmax.f32 %v520_v12, 0.0  ;;  %v124_v57 = vsub.s32 2, %v71_v37 }
  0xcf   :  { %v532_v7 = vmax.f32 %v500_v54, 0.0  ;;  %v470_v9 = vmax.f32 %v350_v0, %v969_v31  ;;  %702 = vmatpush3.bf16.msra.mxu0 %v701_v56  ;;  %739 = vmatpush3.bf16.msra.mxu1 %v701_v56  ;;  %v1102_v58 = vrot.slane %v31_v50, %v72_v44  ;;  %v1110_v59 = vrot.slane %v31_v50, %v94_v53 }
  0xd0   :  { %v521_v13 = vsub.f32 %v323_v49, %v489_v62  ;;  %704 = vmatprep.subr.bf16.mxu0 %v703_v4  ;;  %732 = vmatprep.subr.bf16.mxu1 %v703_v4 }
  0xd1   :  { %v502_v1 = vsub.f32 %v304_v52, %v470_v9  ;;  %v705_v15 = vpack.c.bf16 %v533_v6, %v532_v7  ;;  %v1097_v52 = vrot.slane %v30_v45, %v72_v44  ;;  %v1108_v6 = vrot.slane %v30_v45, %v94_v53 }
  0xd2   :  { %v553_v17 = vmax.f32 %v521_v13, 0.0  ;;  %v172_v18 = vpop.permute.xlu1 %171  ;;  %v358_v19 = vpop.permute.xlu0 %357 }
  0xd3   :  { %v534_v22 = vmax.f32 %v502_v1, 0.0  ;;  %v472_v23 = vmax.f32 %v358_v19, %v969_v31  ;;  %706 = vmatpush3.bf16.msra.mxu0 %v705_v15  ;;  %740 = vmatpush3.bf16.msra.mxu1 %v705_v15  ;;  %v307_v30 = vmin.f32 %v172_v18, %v974_v32 }
  0xd4   :  { %708 = vmatprep.subr.bf16.mxu0 %v707_v20  ;;  %733 = vmatprep.subr.bf16.mxu1 %v707_v20  ;;  %v711_v28 = vpack.c.bf16 %v553_v17, %v552_v24  ;;  %v308_v17 = vmin.f32 %v1017_v3, %v974_v32 }
  0xd5   :  { %v709_v25 = vpack.c.bf16 %v535_v21, %v534_v22  ;;  %v504_v26 = vsub.f32 %v306_v16, %v472_v23  ;;  %v1119_v22 = vrot.slane %v31_v50, %v124_v57  ;;  %v1121_v23 = vrot.slane %v30_v45, %v124_v57 }
  0xd6   :  { %v1076_v27 = vpop.permute.xlu0 %365  ;;  %v329_v57 = vmin.f32 %v1028_v10, %v974_v32 }
  0xd7   :  { %v362_v29 = vpop.permute.xlu1 %361  ;;  %710 = vmatpush3.bf16.msra.mxu0 %v709_v25  ;;  %741 = vmatpush3.bf16.msra.mxu1 %v709_v25  ;;  %v536_v34 = vmax.f32 %v504_v26, 0.0  ;;  %v474_v18 = vmax.f32 %v1076_v27, %v969_v31 }
  0xd8   :  { %v473_v33 = vmax.f32 %v362_v29, %v969_v31  ;;  %712 = vmatprep.subr.bf16.mxu0 %v711_v28  ;;  %734 = vmatprep.subr.bf16.mxu1 %v711_v28 }
  0xd9   :  { %v506_v28 = vsub.f32 %v308_v17, %v474_v18 }
  0xda   :  { %v505_v35 = vsub.f32 %v307_v30, %v473_v33  ;;  %v1080_v36 = vpop.permute.xlu0 %373 }
  0xdb   :  { %v538_v33 = vmax.f32 %v506_v28, 0.0  ;;  %v476_v50 = vmax.f32 %v1080_v36, %v969_v31 }
  0xdc   :  { %v537_v38 = vmax.f32 %v505_v35, 0.0  ;;  %v257_v39 = vpop.permute.xlu1 %256 }
  0xdd   :  { %v324_v54 = vmin.f32 %v257_v39, %v974_v32 }
  0xde   :  { %v382_v40 = vpop.permute.xlu0 %381  ;;  %v713_v41 = vpack.c.bf16 %v537_v38, %v536_v34 }
  0xdf   :  { %v478_v43 = vmax.f32 %v382_v40, %v969_v31 }
  0xe0   :  { %714 = vmatpush3.bf16.msra.mxu0 %v713_v41  ;;  %742 = vmatpush3.bf16.msra.mxu1 %v713_v41 }
  0xe1   :  { %v1088_v46 = vsub.f32 %v312_v42, %v478_v43  ;;  %v430_v47 = vpop.permute.xlu1 %429  ;;  %v327_v42 = vmin.f32 %v1019_v5, %v974_v32 }
  0xe2   :  { %v490_v48 = vmax.f32 %v430_v47, %v969_v31  ;;  %v390_v49 = vpop.permute.xlu0 %389 }
  0xe3   :  { %v480_v51 = vmax.f32 %v390_v49, %v969_v31 }
  0xe4   :  { %v522_v62 = vsub.f32 %v324_v54, %v490_v48 }
  0xe5   :  { %v1100_v55 = vsub.f32 %v314_v11, %v480_v51  ;;  %v434_v56 = vpop.permute.xlu1 %433  ;;  %v310_v51 = vmin.f32 %v1025_v8, %v974_v32 }
  0xe6   :  { %v491_v0 = vmax.f32 %v434_v56, %v969_v31  ;;  %v86_v4 = vpop.permute.xlu0 %85  ;;  %v554_v12 = vmax.f32 %v522_v62, 0.0 }
  0xe7   :  { %v90_v2 = vmin.f32 %v1097_v52, %v86_v4  ;;  %v91_v9 = vmin.f32 %v1102_v58, %v86_v4  ;;  %v508_v54 = vsub.f32 %v310_v51, %v476_v50 }
  0xe8   :  { %v523_v7 = vsub.f32 %v325_v61, %v491_v0 }
  0xe9   :  { %v540_v62 = vmax.f32 %v508_v54, 0.0 }
  0xea   :  { %v555_v13 = vmax.f32 %v523_v7, 0.0  ;;  %v182_v1 = vpop.permute.xlu1 %181  ;;  %v108_v15 = vpop.permute.xlu0 %107 }
  0xeb   :  { %v112_v63 = vmax.f32 %v1108_v6, %v108_v15  ;;  %v113_v16 = vmax.f32 %v1110_v59, %v108_v15  ;;  %v309_v29 = vmin.f32 %v182_v1, %v974_v32 }
  0xec   :  { %v715_v19 = vpack.c.bf16 %v555_v13, %v554_v12 }
  0xed   :  { %v116_v20 = vsub.f32 %v90_v2, %v112_v63  ;;  %v117_v21 = vsub.f32 %v91_v9, %v113_v16 }
  0xee   :  { %716 = vmatprep.subr.bf16.mxu0 %v715_v19  ;;  %735 = vmatprep.subr.bf16.mxu1 %v715_v19 }
  0xef   :  { %v370_v24 = vpop.permute.xlu1 %369  ;;  %v120_v25 = vmax.f32 %v116_v20, 0.0  ;;  %v121_v26 = vmax.f32 %v117_v21, 0.0 }
  0xf0   :  { %v475_v3 = vmax.f32 %v370_v24, %v969_v31  ;;  %v542_v24 = vmax.f32 %v1088_v46, 0.0 }
  0xf1   :  { %v133_v60 = vmul.f32 %v1119_v22, %v121_v26  ;;  %v1127_v27 = vmul.f32 %v1121_v23, %v120_v25 }
  0xf2   :  { %v507_v30 = vsub.f32 %v309_v29, %v475_v3 }
  0xf3   :  { %633 = vmatprep.mubr.f32.mxu1 %v133_v60 }
  0xf4   :  { %v539_v34 = vmax.f32 %v507_v30, 0.0  ;;  %v267_v35 = vpop.permute.xlu1 %266  ;;  %v331_v30 = vmin.f32 %v1036_v14, %v974_v32 }
  0xf5   :  { %v326_v40 = vmin.f32 %v267_v35, %v974_v32 }
  0xf6   :  { %v717_v37 = vpack.c.bf16 %v539_v34, %v538_v33 }
  0xf8   :  { %718 = vmatpush3.bf16.msra.mxu0 %v717_v37  ;;  %743 = vmatpush3.bf16.msra.mxu1 %v717_v37 }
  0xf9   :  { %v438_v38 = vpop.permute.xlu1 %437 }
  0xfa   :  { %v492_v39 = vmax.f32 %v438_v38, %v969_v31 }
  0xfc   :  { %v524_v43 = vsub.f32 %v326_v40, %v492_v39 }
  0xfd   :  { %v442_v41 = vpop.permute.xlu1 %441 }
  0xfe   :  { %v493_v44 = vmax.f32 %v442_v41, %v969_v31  ;;  %v556_v47 = vmax.f32 %v524_v43, 0.0 }
 0x100   :  { %v525_v45 = vsub.f32 %v327_v42, %v493_v44 }
 0x102   :  { %v557_v48 = vmax.f32 %v525_v45, 0.0  ;;  %v192_v49 = vpop.permute.xlu1 %191  ;;  %v544_v45 = vmax.f32 %v1100_v55, 0.0 }
 0x103   :  { %v311_v5 = vmin.f32 %v192_v49, %v974_v32 }
 0x104   :  { %v719_v11 = vpack.c.bf16 %v557_v48, %v556_v47 }
 0x106   :  { %720 = vmatprep.subr.bf16.mxu0 %v719_v11  ;;  %736 = vmatprep.subr.bf16.mxu1 %v719_v11 }
 0x107   :  { %v378_v53 = vpop.permute.xlu1 %377 }
 0x108   :  { %v477_v56 = vmax.f32 %v378_v53, %v969_v31 }
 0x10a   :  { %v509_v61 = vsub.f32 %v311_v5, %v477_v56 }
 0x10c   :  { %v541_v0 = vmax.f32 %v509_v61, 0.0  ;;  %v277_v4 = vpop.permute.xlu1 %276 }
 0x10d   :  { %v328_v8 = vmin.f32 %v277_v4, %v974_v32 }
 0x10e   :  { %v721_v2 = vpack.c.bf16 %v541_v0, %v540_v62 }
 0x110   :  { %722 = vmatpush3.bf16.msra.mxu0 %v721_v2  ;;  %744 = vmatpush3.bf16.msra.mxu1 %v721_v2 }
 0x111   :  { %v446_v36 = vpop.permute.xlu1 %445 }
 0x112   :  { %v494_v7 = vmax.f32 %v446_v36, %v969_v31 }
 0x114   :  { %v526_v12 = vsub.f32 %v328_v8, %v494_v7 }
 0x115   :  { %v450_v9 = vpop.permute.xlu1 %449 }
 0x116   :  { %v495_v13 = vmax.f32 %v450_v9, %v969_v31  ;;  %v558_v15 = vmax.f32 %v526_v12, 0.0 }
 0x118   :  { %v527_v1 = vsub.f32 %v329_v57, %v495_v13 }
 0x11a   :  { %v559_v63 = vmax.f32 %v527_v1, 0.0  ;;  %v202_v16 = vpop.permute.xlu1 %201 }
 0x11b   :  { %v313_v19 = vmin.f32 %v202_v16, %v974_v32 }
 0x11c   :  { %v723_v17 = vpack.c.bf16 %v559_v63, %v558_v15 }
 0x11e   :  { %724 = vmatprep.subr.bf16.mxu0 %v723_v17  ;;  %737 = vmatprep.subr.bf16.mxu1 %v723_v17 }
 0x11f   :  { %v386_v18 = vpop.permute.xlu1 %385 }
 0x120   :  { %v479_v20 = vmax.f32 %v386_v18, %v969_v31 }
 0x122   :  { %v511_v21 = vsub.f32 %v313_v19, %v479_v20 }
 0x124   :  { %v543_v25 = vmax.f32 %v511_v21, 0.0  ;;  %v287_v10 = vpop.permute.xlu1 %286 }
 0x125   :  { %v330_v3 = vmin.f32 %v287_v10, %v974_v32 }
 0x126   :  { %v725_v26 = vpack.c.bf16 %v543_v25, %v542_v24 }
 0x128   :  { %726 = vmatpush3.bf16.msra.mxu0 %v725_v26  ;;  %745 = vmatpush3.bf16.msra.mxu1 %v725_v26 }
 0x129   :  { %v454_v28 = vpop.permute.xlu1 %453 }
 0x12a   :  { %v496_v29 = vmax.f32 %v454_v28, %v969_v31 }
 0x12c   :  { %v528_v33 = vsub.f32 %v330_v3, %v496_v29 }
 0x12d   :  { %v458_v60 = vpop.permute.xlu1 %457 }
 0x12e   :  { %v497_v34 = vmax.f32 %v458_v60, %v969_v31  ;;  %v560_v37 = vmax.f32 %v528_v33, 0.0 }
 0x130   :  { %v529_v35 = vsub.f32 %v331_v30, %v497_v34 }
 0x132   :  { %v561_v46 = vmax.f32 %v529_v35, 0.0  ;;  %v212_v38 = vpop.permute.xlu1 %211 }
 0x133   :  { %v315_v41 = vmin.f32 %v212_v38, %v974_v32 }
 0x134   :  { %v727_v39 = vpack.c.bf16 %v561_v46, %v560_v37 }
 0x136   :  { %728 = vmatprep.subr.bf16.mxu0 %v727_v39  ;;  %738 = vmatprep.subr.bf16.mxu1 %v727_v39 }
 0x137   :  { %v394_v40 = vpop.permute.xlu1 %393 }
 0x138   :  { %v481_v42 = vmax.f32 %v394_v40, %v969_v31 }
 0x13a   :  { %v513_v43 = vsub.f32 %v315_v41, %v481_v42 }
 0x13b   :  { %v81_v44 = vpop.permute.xlu1 %80 }
 0x13c   :  { %v545_v14 = vmax.f32 %v513_v43, 0.0  ;;  %v88_v48 = vmin.f32 %v1097_v52, %v81_v44  ;;  %v89_v50 = vmin.f32 %v1102_v58, %v81_v44 }
 0x13e   :  { %v729_v47 = vpack.c.bf16 %v545_v14, %v544_v45 }
 0x13f   :  { %v103_v49 = vpop.permute.xlu1 %102 }
 0x140   :  { %v110_v11 = vmax.f32 %v1108_v6, %v103_v49  ;;  %v111_v51 = vmax.f32 %v1110_v59, %v103_v49  ;;  %730 = vmatpush3.bf16.msra.mxu0 %v729_v47  ;;  %746 = vmatpush3.bf16.msra.mxu1 %v729_v47 }
 0x142   :  { %v114_v32 = vsub.f32 %v88_v48, %v110_v11  ;;  %v115_v53 = vsub.f32 %v89_v50, %v111_v51 }
 0x143   :  { %634 = vmatmul.mubr.f32.vlgmr.msra.gmra.mrb[0].mxu1 %v1127_v27 }
 0x144   :  { %v118_v31 = vmax.f32 %v114_v32, 0.0  ;;  %v119_v54 = vmax.f32 %v115_v53, 0.0 }
 0x146   :  { %v131_v55 = vmul.f32 %v1119_v22, %v119_v54  ;;  %v130_v5 = vmul.f32 %v1121_v23, %v118_v31 }
 0x148   :  { %628 = vmatprep.mubr.f32.mxu0 %v131_v55 }
 0x149   :  { %629 = vmatmul.mubr.f32.vlgmr.msra.gmra.mrb[0].mxu0 %v130_v5 }
 0x216   :  { %v696_v52 = vpop.f32.mrb[0].mxu1 }
 0x217   :  { %v697_v58 = vpop.f32.mrb[1].mxu1 }
 0x218   :  { %v698_v56 = vadd.f32 %v697_v58, %v696_v52 }
 0x21a   :  { %642 = vst [vmem:[#allocation2 + $0x8] sm:$0xff] %v698_v56 }
 0x21c   :  { %v693_v6 = vpop.f32.mrb[0].mxu0 }
 0x21d   :  { %v694_v59 = vpop.f32.mrb[1].mxu0 }
 0x21e   :  { %v695_v61 = vadd.f32 %v694_v59, %v693_v6 }
 0x220   :  { %641 = vst [vmem:[#allocation2] sm:$0xff] %v695_v61 }
 0x221   :  { %797 = shalt.err (!%p794_p4)
}
 0x222   :  { %s798_s28 = scalar_lea.hbm %s1181_s6, 256 }
 0x223   :  { %p799_p5 = scmp.ne.s32.totalorder %s1181_s6, %s798_s28  ;;  %p802_p6 = scmp.lt.u32.totalorder %s798_s28, %s1181_s6 }
 0x225   :  { %p804_p7 = pnand %p802_p6, %p799_p5 }
 0x227   :  { %807 = shalt.err (!%p804_p7)
}
 0x228   :  { %s813_s9 = smov 128   ;;  %s814_s10 = smov 8  }
 0x229   :  { %654 = dma.vmem_to_hbm [thread:$0]  %s649_s24, 256, %s1181_s6, [#allocation3], %s813_s9, %s813_s9, %s814_s10  }
 0x22a   :  { %808 = dma.done.wait [#allocation3], 256  }
 0x22b   :  { %809 = vsyncadd [#allocation3], 4294967040 }
 0x22c   :  { %658 = vsyncpa [#allocation3], 1 }

</bundles_post_ra>
